<compile_context>
chip_gen: v6e
topology: v6e:2x2x1
jax: 0.10.0
libtpu: 0.0.40
codegen_flags: <defaults>
</compile_context>

<pallas_src>
import functools
import math

import jax
import jax.numpy as jnp
from jax.experimental import pallas as pl
from jax.experimental.pallas import tpu as pltpu


def _round_up(n, m):
    return ((n + m - 1) // m) * m


def _tpu_defaults():
    """Generation-aware (row_block, vmem_limit_bytes)."""
    vmem_cap = None
    try:
        info = pltpu.get_tpu_info()
        vmem_cap = getattr(info, "vmem_capacity_bytes", None)
    except Exception:
        vmem_cap = None
    if vmem_cap is None:
        vmem_cap = 64 * 1024 * 1024                 # conservative (v7x-sized)
    if vmem_cap >= 128 * 1024 * 1024:               # v5e / v6e
        return 512, 100 * 1024 * 1024
    return 256, 48 * 1024 * 1024                    # v7x (64 MiB physical)


def _ln_modulate_project(x, shift, scale, wlin_ref, blin_ref, o_ref, critic):
    """Shared epilogue: LayerNorm -> modulate -> (critic norm) -> final linear."""
    # LayerNorm (no affine, eps=1e-6), two-pass moments, all f32.
    mu = jnp.mean(x, axis=-1, keepdims=True)
    xc = x - mu
    var = jnp.mean(xc * xc, axis=-1, keepdims=True)
    x_norm = xc * jax.lax.rsqrt(var + 1e-6)

    # modulate(x, shift, scale) = x * (1 + scale) + shift; the "+1" is folded
    # into the scale bias in the wrapper, so this is a plain multiply-add.
    y = x_norm * scale + shift

    if critic:
        # y / ||y||_2 via rsqrt-multiply (EUP path, no vector divide).
        y = y * jax.lax.rsqrt(jnp.sum(y * y, axis=-1, keepdims=True))

    # Final linear, lane-padded output width -> unmasked MXU + store.
    out = jnp.dot(y.astype(wlin_ref.dtype), wlin_ref[...],
                  preferred_element_type=jnp.float32) + blin_ref[...]
    o_ref[...] = out.astype(o_ref.dtype)


def _final_layer_kernel_split(x_ref, c_ref, wsh_ref, bsh_ref, wsc_ref, bsc_ref,
                              wlin_ref, blin_ref, o_ref, *, critic):
    """General-D path: two (TM,D)x(D,D) modulation dots against split weights."""
    mxu_dtype = wsh_ref.dtype
    x = x_ref[...].astype(jnp.float32)            # (TM, D), f32 elementwise
    c = c_ref[...].astype(jnp.float32)            # (TM, D)

    c_silu = (c * jax.nn.sigmoid(c)).astype(mxu_dtype)     # MXU operand only
    shift = jnp.dot(c_silu, wsh_ref[...],
                    preferred_element_type=jnp.float32) + bsh_ref[...]
    scale = jnp.dot(c_silu, wsc_ref[...],
                    preferred_element_type=jnp.float32) + bsc_ref[...]

    _ln_modulate_project(x, shift, scale, wlin_ref, blin_ref, o_ref, critic)


def _final_layer_kernel_fused(x_ref, c_ref, wmod_ref, bmod_ref,
                              wlin_ref, blin_ref, o_ref, *, critic, d):
    """D % 128 == 0 path: one (TM,D)x(D,2D) dot, lane-aligned split at col D."""
    mxu_dtype = wmod_ref.dtype
    x = x_ref[...].astype(jnp.float32)
    c = c_ref[...].astype(jnp.float32)

    c_silu = (c * jax.nn.sigmoid(c)).astype(mxu_dtype)
    mod = jnp.dot(c_silu, wmod_ref[...],
                  preferred_element_type=jnp.float32) + bmod_ref[...]
    shift = mod[:, :d]         # lane-aligned (d % 128 == 0), zero-cost slices
    scale = mod[:, d:]

    _ln_modulate_project(x, shift, scale, wlin_ref, blin_ref, o_ref, critic)


def final_layer_forward(x, c, w_mod, b_mod, w_lin, b_lin, *, critic=False,
                        row_block=None, mxu_dtype=jnp.bfloat16):
    """x, c: (B, T, D).  w_mod: (2D, D), b_mod: (2D,), w_lin: (A, D), b_lin: (A,).

    mxu_dtype: dtype for matmul operands (default bf16); accumulation and all
    elementwise math stay in f32 regardless.  Pass None to use x.dtype.
    """
    B, T, D = x.shape
    A = w_lin.shape[0]
    rows = B * T

    default_rb, vmem_limit = _tpu_defaults()
    rb = default_rb if row_block is None else row_block
    # Row tile: multiple of 8 (sublane), clamped for tiny inputs.
    rb = _round_up(min(rb, _round_up(rows, 8)), 8)
    # v7x megacore: make sure the "parallel" row axis has >= 2 steps when there
    # is enough work, so both TensorCores get rows and the pipeline can overlap.
    if rows > 8 and pl.cdiv(rows, rb) < 2:
        rb = _round_up(pl.cdiv(rows, 2), 8)
    grid = (pl.cdiv(rows, rb),)

    # Lane-dense output width (unmasked stores / fuller MXU lanes).
    A_p = _round_up(A, 128)

    w_dtype = jnp.dtype(mxu_dtype) if mxu_dtype is not None else x.dtype

    # Activations: no wrapper-side cast / pad (reshape of a contiguous array is
    # free); the ragged last row tile is handled by Pallas' masked edge block.
    x2 = x.reshape(rows, D)
    c2 = c.reshape(rows, D)

    # Final linear, zero-padded to the lane-dense width (one-time, weights only).
    w_lin_t = jnp.zeros((D, A_p), w_dtype).at[:, :A].set(w_lin.T.astype(w_dtype))
    b_lin_p = jnp.zeros((1, A_p), jnp.float32).at[:, :A].set(
        b_lin.astype(jnp.float32))

    fuse_mod = (D % 128 == 0)
    if fuse_mod:
        # Single (D, 2D) RHS; "+1" of modulate folded into the scale-half bias.
        w_mod_t = w_mod.T.astype(w_dtype)                                # (D, 2D)
        b_mod_f = jnp.concatenate([b_mod[:D], b_mod[D:] + 1.0]).reshape(
            1, 2 * D).astype(jnp.float32)
        kernel = functools.partial(_final_layer_kernel_fused, critic=critic, d=D)
        weight_args = (w_mod_t, b_mod_f)
        weight_block_shapes = [(D, 2 * D), (1, 2 * D)]
    else:
        # Pre-split modulation weight into shift / scale halves (lane-aligned).
        w_shift_t = w_mod[:D].T.astype(w_dtype)                          # (D, D)
        w_scale_t = w_mod[D:].T.astype(w_dtype)                          # (D, D)
        b_shift = b_mod[:D].reshape(1, D).astype(jnp.float32)
        b_scale = (b_mod[D:] + 1.0).reshape(1, D).astype(jnp.float32)    # +1 folded
        kernel = functools.partial(_final_layer_kernel_split, critic=critic)
        weight_args = (w_shift_t, b_shift, w_scale_t, b_scale)
        weight_block_shapes = [(D, D), (1, D), (D, D), (1, D)]

    def run(single_buffer_weights):
        if single_buffer_weights:
            # Constant index_map -> never re-fetched; one buffer is enough.
            def rspec(shape):
                return pl.BlockSpec(shape, lambda i: (0, 0),
                                    pipeline_mode=pl.Buffered(1))
        else:
            def rspec(shape):
                return pl.BlockSpec(shape, lambda i: (0, 0))

        in_specs = [
            pl.BlockSpec((rb, D), lambda i: (i, 0)),      # x rows
            pl.BlockSpec((rb, D), lambda i: (i, 0)),      # c rows
            *[rspec(s) for s in weight_block_shapes],     # resident mod weights
            rspec((D, A_p)),                              # W_lin^T (padded)
            rspec((1, A_p)),                              # b_lin (padded)
        ]
        return pl.pallas_call(
            kernel,
            out_shape=jax.ShapeDtypeStruct((rows, A_p), x.dtype),
            grid_spec=pltpu.PrefetchScalarGridSpec(
                num_scalar_prefetch=0,
                grid=grid,
                in_specs=in_specs,
                out_specs=pl.BlockSpec((rb, A_p), lambda i: (i, 0)),
            ),
            compiler_params=pltpu.CompilerParams(
                dimension_semantics=("parallel",),   # rows split across TCs (v7x)
                vmem_limit_bytes=vmem_limit),
        )(x2, c2, *weight_args, w_lin_t, b_lin_p)

    try:
        out_p = run(True)
    except Exception:
        # pipeline_mode=pl.Buffered(1) unsupported on this jax/libtpu combo:
        # fall back to default double-buffering of the resident weights.
        out_p = run(False)

    # Drop the lane padding.
    return out_p[:, :A].reshape(B, T, A)


def _reference(x, c, w_mod, b_mod, w_lin, b_lin, critic):
    x = x.astype(jnp.float32)
    c = c.astype(jnp.float32)
    mod = jax.nn.silu(c) @ w_mod.T + b_mod
    D = x.shape[-1]
    shift, scale = mod[..., :D], mod[..., D:]
    mu = jnp.mean(x, axis=-1, keepdims=True)
    var = jnp.mean((x - mu) ** 2, axis=-1, keepdims=True)
    xn = (x - mu) / jnp.sqrt(var + 1e-6)
    y = xn * (1 + scale) + shift
    if critic:
        y = y / jnp.linalg.norm(y, axis=-1, keepdims=True)
    return y @ w_lin.T + b_lin


def _make_params(key, D, A):
    # Deterministic parameter init (orthogonal, gain = calculate_gain('relu')
    # = sqrt(2); biases zero), matching wt_init_(nn.Linear(...)).
    k_wm, k_wl = jax.random.split(key)
    ortho = jax.nn.initializers.orthogonal(scale=math.sqrt(2.0))
    w_mod = ortho(k_wm, (2 * D, D), jnp.float32)   # adaLN_modulation[1].weight
    b_mod = jnp.zeros((2 * D,), jnp.float32)       # adaLN_modulation[1].bias
    w_lin = ortho(k_wl, (A, D), jnp.float32)       # linear.weight
    b_lin = jnp.zeros((A,), jnp.float32)           # linear.bias
    return w_mod, b_mod, w_lin, b_lin


if __name__ == "__main__":
    key = jax.random.PRNGKey(0)
    k_x, k_c, k_p, k_p2 = jax.random.split(key, 4)

    # --- 1) split-weight path (D not a multiple of 128), f32 MXU, tight tol ---
    B, T, D, A = 2, 8, 32, 4
    x = jax.random.normal(k_x, (B, T, D), dtype=jnp.float32)
    c = jax.random.normal(k_c, (B, T, D), dtype=jnp.float32)
    w_mod, b_mod, w_lin, b_lin = _make_params(k_p, D, A)

    for critic in (False, True):
        out = final_layer_forward(x, c, w_mod, b_mod, w_lin, b_lin,
                                  critic=critic, mxu_dtype=jnp.float32)
        out = jax.block_until_ready(out)
        ref = _reference(x, c, w_mod, b_mod, w_lin, b_lin, critic)
        assert out.shape == (B, T, A)
        assert jnp.allclose(out, ref, atol=1e-4, rtol=1e-4), (
            f"mismatch (critic={critic}): {jnp.max(jnp.abs(out - ref))}")

    # --- 2) ragged rows (B*T not a multiple of the row tile): masked edge block ---
    T_odd = 7
    x_odd = jax.random.normal(k_x, (B, T_odd, D), dtype=jnp.float32)
    c_odd = jax.random.normal(k_c, (B, T_odd, D), dtype=jnp.float32)
    for critic in (False, True):
        out = final_layer_forward(x_odd, c_odd, w_mod, b_mod, w_lin, b_lin,
                                  critic=critic, mxu_dtype=jnp.float32)
        out = jax.block_until_ready(out)
        ref = _reference(x_odd, c_odd, w_mod, b_mod, w_lin, b_lin, critic)
        assert out.shape == (B, T_odd, A)
        assert jnp.allclose(out, ref, atol=1e-4, rtol=1e-4), (
            f"ragged mismatch (critic={critic}): {jnp.max(jnp.abs(out - ref))}")

    # --- 3) fused-modulation path (D % 128 == 0), f32 MXU, tight tol ---
    D2 = 128
    x2 = jax.random.normal(k_x, (B, T, D2), dtype=jnp.float32)
    c2 = jax.random.normal(k_c, (B, T, D2), dtype=jnp.float32)
    w_mod2, b_mod2, w_lin2, b_lin2 = _make_params(k_p2, D2, A)
    for critic in (False, True):
        out = final_layer_forward(x2, c2, w_mod2, b_mod2, w_lin2, b_lin2,
                                  critic=critic, mxu_dtype=jnp.float32)
        out = jax.block_until_ready(out)
        ref = _reference(x2, c2, w_mod2, b_mod2, w_lin2, b_lin2, critic)
        assert out.shape == (B, T, A)
        assert jnp.allclose(out, ref, atol=1e-4, rtol=1e-4), (
            f"fused mismatch (critic={critic}): {jnp.max(jnp.abs(out - ref))}")

    # --- 4) default path: bf16 MXU operands, f32 accumulation (coarse check) ---
    out_bf16 = final_layer_forward(x, c, w_mod, b_mod, w_lin, b_lin,
                                   critic=False)          # mxu_dtype=bf16 default
    out_bf16 = jax.block_until_ready(out_bf16)
    ref_f32 = _reference(x, c, w_mod, b_mod, w_lin, b_lin, False)
    assert out_bf16.shape == (B, T, A)
    assert bool(jnp.all(jnp.isfinite(out_bf16)))
    assert float(jnp.max(jnp.abs(out_bf16 - ref_f32))) < 0.5

    print("KERNEL_OK")
</pallas_src>

<mosaic_0001>
module attributes {stable_mosaic.version = 11 : i64} {
  func.func @_final_layer_kernel_split(%arg0: i32, %arg1: memref<8x32xf32, #tpu.memory_space<vmem>>, %arg2: memref<8x32xf32, #tpu.memory_space<vmem>>, %arg3: memref<32x32xf32, #tpu.memory_space<vmem>>, %arg4: memref<1x32xf32, #tpu.memory_space<vmem>>, %arg5: memref<32x32xf32, #tpu.memory_space<vmem>>, %arg6: memref<1x32xf32, #tpu.memory_space<vmem>>, %arg7: memref<32x128xf32, #tpu.memory_space<vmem>>, %arg8: memref<1x128xf32, #tpu.memory_space<vmem>>, %arg9: memref<8x128xf32, #tpu.memory_space<vmem>>) attributes {dimension_semantics = [#tpu.dimension_semantics<parallel>], iteration_bounds = array<i64: 2>, scalar_prefetch = 0 : i64, scratch_operands = 0 : i64, tpu.core_type = #tpu.core_type<tc>, window_params = [{transform_indices = @transform_0, window_bounds = array<i64: 8, 32>}, {transform_indices = @transform_1, window_bounds = array<i64: 8, 32>}, {pipeline_mode = #tpu.pipeline_mode<synchronous>, transform_indices = @transform_2, window_bounds = array<i64: 32, 32>}, {pipeline_mode = #tpu.pipeline_mode<synchronous>, transform_indices = @transform_3, window_bounds = array<i64: 1, 32>}, {pipeline_mode = #tpu.pipeline_mode<synchronous>, transform_indices = @transform_4, window_bounds = array<i64: 32, 32>}, {pipeline_mode = #tpu.pipeline_mode<synchronous>, transform_indices = @transform_5, window_bounds = array<i64: 1, 32>}, {pipeline_mode = #tpu.pipeline_mode<synchronous>, transform_indices = @transform_6, window_bounds = array<i64: 32, 128>}, {pipeline_mode = #tpu.pipeline_mode<synchronous>, transform_indices = @transform_7, window_bounds = array<i64: 1, 128>}, {transform_indices = @transform_8, window_bounds = array<i64: 8, 128>}]} {
    %c0 = arith.constant 0 : index
    %c0_0 = arith.constant 0 : index
    %0 = vector.load %arg1[%c0, %c0_0] : memref<8x32xf32, #tpu.memory_space<vmem>>, vector<8x32xf32>
    %c0_1 = arith.constant 0 : index
    %c0_2 = arith.constant 0 : index
    %1 = vector.load %arg2[%c0_1, %c0_2] : memref<8x32xf32, #tpu.memory_space<vmem>>, vector<8x32xf32>
    %2 = arith.negf %1 : vector<8x32xf32>
    %3 = math.exp %2 : vector<8x32xf32>
    %cst = arith.constant 1.000000e+00 : f32
    %4 = vector.broadcast %cst : f32 to vector<8x32xf32>
    %5 = arith.addf %4, %3 : vector<8x32xf32>
    %6 = arith.divf %4, %5 : vector<8x32xf32>
    %7 = arith.mulf %1, %6 : vector<8x32xf32>
    %c0_3 = arith.constant 0 : index
    %c0_4 = arith.constant 0 : index
    %8 = vector.load %arg3[%c0_3, %c0_4] : memref<32x32xf32, #tpu.memory_space<vmem>>, vector<32x32xf32>
    %cst_5 = arith.constant dense<0.000000e+00> : vector<8x32xf32>
    %9 = tpu.matmul %7, %8, %cst_5 {dimension_numbers = #tpu.dot_dimension_numbers<[1], [0], [0], [1], [0, 0, 1, 1], [], []>} : vector<8x32xf32>, vector<32x32xf32>, vector<8x32xf32> -> vector<8x32xf32>
    %c0_6 = arith.constant 0 : index
    %c0_7 = arith.constant 0 : index
    %10 = vector.load %arg4[%c0_6, %c0_7] : memref<1x32xf32, #tpu.memory_space<vmem>>, vector<1x32xf32>
    %11 = vector.broadcast %10 : vector<1x32xf32> to vector<8x32xf32>
    %12 = arith.addf %9, %11 : vector<8x32xf32>
    %c0_8 = arith.constant 0 : index
    %c0_9 = arith.constant 0 : index
    %13 = vector.load %arg5[%c0_8, %c0_9] : memref<32x32xf32, #tpu.memory_space<vmem>>, vector<32x32xf32>
    %cst_10 = arith.constant dense<0.000000e+00> : vector<8x32xf32>
    %14 = tpu.matmul %7, %13, %cst_10 {dimension_numbers = #tpu.dot_dimension_numbers<[1], [0], [0], [1], [0, 0, 1, 1], [], []>} : vector<8x32xf32>, vector<32x32xf32>, vector<8x32xf32> -> vector<8x32xf32>
    %c0_11 = arith.constant 0 : index
    %c0_12 = arith.constant 0 : index
    %15 = vector.load %arg6[%c0_11, %c0_12] : memref<1x32xf32, #tpu.memory_space<vmem>>, vector<1x32xf32>
    %16 = vector.broadcast %15 : vector<1x32xf32> to vector<8x32xf32>
    %17 = arith.addf %14, %16 : vector<8x32xf32>
    %cst_13 = arith.constant dense<0.000000e+00> : vector<8xf32>
    %18 = vector.multi_reduction <add>, %0, %cst_13 [1] : vector<8x32xf32> to vector<8xf32>
    %19 = vector.shape_cast %18 : vector<8xf32> to vector<8x1xf32>
    %cst_14 = arith.constant 3.200000e+01 : f32
    %20 = vector.broadcast %cst_14 : f32 to vector<8x1xf32>
    %21 = arith.divf %19, %20 : vector<8x1xf32>
    %22 = vector.broadcast %21 : vector<8x1xf32> to vector<8x32xf32>
    %23 = arith.subf %0, %22 : vector<8x32xf32>
    %24 = arith.mulf %23, %23 : vector<8x32xf32>
    %cst_15 = arith.constant dense<0.000000e+00> : vector<8xf32>
    %25 = vector.multi_reduction <add>, %24, %cst_15 [1] : vector<8x32xf32> to vector<8xf32>
    %26 = vector.shape_cast %25 : vector<8xf32> to vector<8x1xf32>
    %cst_16 = arith.constant 3.200000e+01 : f32
    %27 = vector.broadcast %cst_16 : f32 to vector<8x1xf32>
    %28 = arith.divf %26, %27 : vector<8x1xf32>
    %cst_17 = arith.constant 9.99999997E-7 : f32
    %29 = vector.broadcast %cst_17 : f32 to vector<8x1xf32>
    %30 = arith.addf %28, %29 : vector<8x1xf32>
    %31 = math.rsqrt %30 : vector<8x1xf32>
    %32 = vector.broadcast %31 : vector<8x1xf32> to vector<8x32xf32>
    %33 = arith.mulf %23, %32 : vector<8x32xf32>
    %34 = arith.mulf %33, %17 : vector<8x32xf32>
    %35 = arith.addf %34, %12 : vector<8x32xf32>
    %c0_18 = arith.constant 0 : index
    %c0_19 = arith.constant 0 : index
    %36 = vector.load %arg7[%c0_18, %c0_19] : memref<32x128xf32, #tpu.memory_space<vmem>>, vector<32x128xf32>
    %cst_20 = arith.constant dense<0.000000e+00> : vector<8x128xf32>
    %37 = tpu.matmul %35, %36, %cst_20 {dimension_numbers = #tpu.dot_dimension_numbers<[1], [0], [0], [1], [0, 0, 1, 1], [], []>} : vector<8x32xf32>, vector<32x128xf32>, vector<8x128xf32> -> vector<8x128xf32>
    %c0_21 = arith.constant 0 : index
    %c0_22 = arith.constant 0 : index
    %38 = vector.load %arg8[%c0_21, %c0_22] : memref<1x128xf32, #tpu.memory_space<vmem>>, vector<1x128xf32>
    %39 = vector.broadcast %38 : vector<1x128xf32> to vector<8x128xf32>
    %40 = arith.addf %37, %39 : vector<8x128xf32>
    %c0_23 = arith.constant 0 : index
    %c0_24 = arith.constant 0 : index
    %41 = vector.load %arg9[%c0_23, %c0_24] : memref<8x128xf32, #tpu.memory_space<vmem>>, vector<8x128xf32>
    tpu.vector_store %arg9[%c0_23, %c0_24], %40 {strides = array<i32>} : memref<8x128xf32, #tpu.memory_space<vmem>>, vector<8x128xf32>,
    return
  }
  func.func @transform_0(%arg0: i32) -> (i32, i32) {
    %c0_i32 = arith.constant 0 : i32
    %c0_i32_0 = arith.constant 0 : i32
    return %arg0, %c0_i32 : i32, i32
  }
  func.func @transform_1(%arg0: i32) -> (i32, i32) {
    %c0_i32 = arith.constant 0 : i32
    %c0_i32_0 = arith.constant 0 : i32
    return %arg0, %c0_i32 : i32, i32
  }
  func.func @transform_2(%arg0: i32) -> (i32, i32) {
    %c0_i32 = arith.constant 0 : i32
    %c0_i32_0 = arith.constant 0 : i32
    %c0_i32_1 = arith.constant 0 : i32
    return %c0_i32, %c0_i32_0 : i32, i32
  }
  func.func @transform_3(%arg0: i32) -> (i32, i32) {
    %c0_i32 = arith.constant 0 : i32
    %c0_i32_0 = arith.constant 0 : i32
    %c0_i32_1 = arith.constant 0 : i32
    return %c0_i32, %c0_i32_0 : i32, i32
  }
  func.func @transform_4(%arg0: i32) -> (i32, i32) {
    %c0_i32 = arith.constant 0 : i32
    %c0_i32_0 = arith.constant 0 : i32
    %c0_i32_1 = arith.constant 0 : i32
    return %c0_i32, %c0_i32_0 : i32, i32
  }
  func.func @transform_5(%arg0: i32) -> (i32, i32) {
    %c0_i32 = arith.constant 0 : i32
    %c0_i32_0 = arith.constant 0 : i32
    %c0_i32_1 = arith.constant 0 : i32
    return %c0_i32, %c0_i32_0 : i32, i32
  }
  func.func @transform_6(%arg0: i32) -> (i32, i32) {
    %c0_i32 = arith.constant 0 : i32
    %c0_i32_0 = arith.constant 0 : i32
    %c0_i32_1 = arith.constant 0 : i32
    return %c0_i32, %c0_i32_0 : i32, i32
  }
  func.func @transform_7(%arg0: i32) -> (i32, i32) {
    %c0_i32 = arith.constant 0 : i32
    %c0_i32_0 = arith.constant 0 : i32
    %c0_i32_1 = arith.constant 0 : i32
    return %c0_i32, %c0_i32_0 : i32, i32
  }
  func.func @transform_8(%arg0: i32) -> (i32, i32) {
    %c0_i32 = arith.constant 0 : i32
    %c0_i32_0 = arith.constant 0 : i32
    return %arg0, %c0_i32 : i32, i32
  }
}

module attributes {stable_mosaic.version = 11 : i64} {
  func.func @_final_layer_kernel_split(%arg0: i32, %arg1: memref<8x32xf32, #tpu.memory_space<vmem>>, %arg2: memref<8x32xf32, #tpu.memory_space<vmem>>, %arg3: memref<32x32xf32, #tpu.memory_space<vmem>>, %arg4: memref<1x32xf32, #tpu.memory_space<vmem>>, %arg5: memref<32x32xf32, #tpu.memory_space<vmem>>, %arg6: memref<1x32xf32, #tpu.memory_space<vmem>>, %arg7: memref<32x128xf32, #tpu.memory_space<vmem>>, %arg8: memref<1x128xf32, #tpu.memory_space<vmem>>, %arg9: memref<8x128xf32, #tpu.memory_space<vmem>>) attributes {dimension_semantics = [#tpu.dimension_semantics<parallel>], iteration_bounds = array<i64: 2>, scalar_prefetch = 0 : i64, scratch_operands = 0 : i64, tpu.core_type = #tpu.core_type<tc>, window_params = [{transform_indices = @transform_0, window_bounds = array<i64: 8, 32>}, {transform_indices = @transform_1, window_bounds = array<i64: 8, 32>}, {pipeline_mode = #tpu.pipeline_mode<synchronous>, transform_indices = @transform_2, window_bounds = array<i64: 32, 32>}, {pipeline_mode = #tpu.pipeline_mode<synchronous>, transform_indices = @transform_3, window_bounds = array<i64: 1, 32>}, {pipeline_mode = #tpu.pipeline_mode<synchronous>, transform_indices = @transform_4, window_bounds = array<i64: 32, 32>}, {pipeline_mode = #tpu.pipeline_mode<synchronous>, transform_indices = @transform_5, window_bounds = array<i64: 1, 32>}, {pipeline_mode = #tpu.pipeline_mode<synchronous>, transform_indices = @transform_6, window_bounds = array<i64: 32, 128>}, {pipeline_mode = #tpu.pipeline_mode<synchronous>, transform_indices = @transform_7, window_bounds = array<i64: 1, 128>}, {transform_indices = @transform_8, window_bounds = array<i64: 8, 128>}]} {
    %c0 = arith.constant 0 : index
    %c0_0 = arith.constant 0 : index
    %0 = vector.load %arg1[%c0, %c0_0] : memref<8x32xf32, #tpu.memory_space<vmem>>, vector<8x32xf32>
    %c0_1 = arith.constant 0 : index
    %c0_2 = arith.constant 0 : index
    %1 = vector.load %arg2[%c0_1, %c0_2] : memref<8x32xf32, #tpu.memory_space<vmem>>, vector<8x32xf32>
    %2 = arith.negf %1 : vector<8x32xf32>
    %3 = math.exp %2 : vector<8x32xf32>
    %cst = arith.constant 1.000000e+00 : f32
    %4 = vector.broadcast %cst : f32 to vector<8x32xf32>
    %5 = arith.addf %4, %3 : vector<8x32xf32>
    %6 = arith.divf %4, %5 : vector<8x32xf32>
    %7 = arith.mulf %1, %6 : vector<8x32xf32>
    %c0_3 = arith.constant 0 : index
    %c0_4 = arith.constant 0 : index
    %8 = vector.load %arg3[%c0_3, %c0_4] : memref<32x32xf32, #tpu.memory_space<vmem>>, vector<32x32xf32>
    %cst_5 = arith.constant dense<0.000000e+00> : vector<8x32xf32>
    %9 = tpu.matmul %7, %8, %cst_5 {dimension_numbers = #tpu.dot_dimension_numbers<[1], [0], [0], [1], [0, 0, 1, 1], [], []>} : vector<8x32xf32>, vector<32x32xf32>, vector<8x32xf32> -> vector<8x32xf32>
    %c0_6 = arith.constant 0 : index
    %c0_7 = arith.constant 0 : index
    %10 = vector.load %arg4[%c0_6, %c0_7] : memref<1x32xf32, #tpu.memory_space<vmem>>, vector<1x32xf32>
    %11 = vector.broadcast %10 : vector<1x32xf32> to vector<8x32xf32>
    %12 = arith.addf %9, %11 : vector<8x32xf32>
    %c0_8 = arith.constant 0 : index
    %c0_9 = arith.constant 0 : index
    %13 = vector.load %arg5[%c0_8, %c0_9] : memref<32x32xf32, #tpu.memory_space<vmem>>, vector<32x32xf32>
    %cst_10 = arith.constant dense<0.000000e+00> : vector<8x32xf32>
    %14 = tpu.matmul %7, %13, %cst_10 {dimension_numbers = #tpu.dot_dimension_numbers<[1], [0], [0], [1], [0, 0, 1, 1], [], []>} : vector<8x32xf32>, vector<32x32xf32>, vector<8x32xf32> -> vector<8x32xf32>
    %c0_11 = arith.constant 0 : index
    %c0_12 = arith.constant 0 : index
    %15 = vector.load %arg6[%c0_11, %c0_12] : memref<1x32xf32, #tpu.memory_space<vmem>>, vector<1x32xf32>
    %16 = vector.broadcast %15 : vector<1x32xf32> to vector<8x32xf32>
    %17 = arith.addf %14, %16 : vector<8x32xf32>
    %cst_13 = arith.constant dense<0.000000e+00> : vector<8xf32>
    %18 = vector.multi_reduction <add>, %0, %cst_13 [1] : vector<8x32xf32> to vector<8xf32>
    %19 = vector.shape_cast %18 : vector<8xf32> to vector<8x1xf32>
    %cst_14 = arith.constant 3.200000e+01 : f32
    %20 = vector.broadcast %cst_14 : f32 to vector<8x1xf32>
    %21 = arith.divf %19, %20 : vector<8x1xf32>
    %22 = vector.broadcast %21 : vector<8x1xf32> to vector<8x32xf32>
    %23 = arith.subf %0, %22 : vector<8x32xf32>
    %24 = arith.mulf %23, %23 : vector<8x32xf32>
    %cst_15 = arith.constant dense<0.000000e+00> : vector<8xf32>
    %25 = vector.multi_reduction <add>, %24, %cst_15 [1] : vector<8x32xf32> to vector<8xf32>
    %26 = vector.shape_cast %25 : vector<8xf32> to vector<8x1xf32>
    %cst_16 = arith.constant 3.200000e+01 : f32
    %27 = vector.broadcast %cst_16 : f32 to vector<8x1xf32>
    %28 = arith.divf %26, %27 : vector<8x1xf32>
    %cst_17 = arith.constant 9.99999997E-7 : f32
    %29 = vector.broadcast %cst_17 : f32 to vector<8x1xf32>
    %30 = arith.addf %28, %29 : vector<8x1xf32>
    %31 = math.rsqrt %30 : vector<8x1xf32>
    %32 = vector.broadcast %31 : vector<8x1xf32> to vector<8x32xf32>
    %33 = arith.mulf %23, %32 : vector<8x32xf32>
    %34 = arith.mulf %33, %17 : vector<8x32xf32>
    %35 = arith.addf %34, %12 : vector<8x32xf32>
    %c0_18 = arith.constant 0 : index
    %c0_19 = arith.constant 0 : index
    %36 = vector.load %arg7[%c0_18, %c0_19] : memref<32x128xf32, #tpu.memory_space<vmem>>, vector<32x128xf32>
    %cst_20 = arith.constant dense<0.000000e+00> : vector<8x128xf32>
    %37 = tpu.matmul %35, %36, %cst_20 {dimension_numbers = #tpu.dot_dimension_numbers<[1], [0], [0], [1], [0, 0, 1, 1], [], []>} : vector<8x32xf32>, vector<32x128xf32>, vector<8x128xf32> -> vector<8x128xf32>
    %c0_21 = arith.constant 0 : index
    %c0_22 = arith.constant 0 : index
    %38 = vector.load %arg8[%c0_21, %c0_22] : memref<1x128xf32, #tpu.memory_space<vmem>>, vector<1x128xf32>
    %39 = vector.broadcast %38 : vector<1x128xf32> to vector<8x128xf32>
    %40 = arith.addf %37, %39 : vector<8x128xf32>
    %c0_23 = arith.constant 0 : index
    %c0_24 = arith.constant 0 : index
    %41 = vector.load %arg9[%c0_23, %c0_24] : memref<8x128xf32, #tpu.memory_space<vmem>>, vector<8x128xf32>
    tpu.vector_store %arg9[%c0_23, %c0_24], %40 {strides = array<i32>} : memref<8x128xf32, #tpu.memory_space<vmem>>, vector<8x128xf32>,
    return
  }
  func.func @transform_0(%arg0: i32) -> (i32, i32) {
    %c0_i32 = arith.constant 0 : i32
    %c0_i32_0 = arith.constant 0 : i32
    return %arg0, %c0_i32 : i32, i32
  }
  func.func @transform_1(%arg0: i32) -> (i32, i32) {
    %c0_i32 = arith.constant 0 : i32
    %c0_i32_0 = arith.constant 0 : i32
    return %arg0, %c0_i32 : i32, i32
  }
  func.func @transform_2(%arg0: i32) -> (i32, i32) {
    %c0_i32 = arith.constant 0 : i32
    %c0_i32_0 = arith.constant 0 : i32
    %c0_i32_1 = arith.constant 0 : i32
    return %c0_i32, %c0_i32_0 : i32, i32
  }
  func.func @transform_3(%arg0: i32) -> (i32, i32) {
    %c0_i32 = arith.constant 0 : i32
    %c0_i32_0 = arith.constant 0 : i32
    %c0_i32_1 = arith.constant 0 : i32
    return %c0_i32, %c0_i32_0 : i32, i32
  }
  func.func @transform_4(%arg0: i32) -> (i32, i32) {
    %c0_i32 = arith.constant 0 : i32
    %c0_i32_0 = arith.constant 0 : i32
    %c0_i32_1 = arith.constant 0 : i32
    return %c0_i32, %c0_i32_0 : i32, i32
  }
  func.func @transform_5(%arg0: i32) -> (i32, i32) {
    %c0_i32 = arith.constant 0 : i32
    %c0_i32_0 = arith.constant 0 : i32
    %c0_i32_1 = arith.constant 0 : i32
    return %c0_i32, %c0_i32_0 : i32, i32
  }
  func.func @transform_6(%arg0: i32) -> (i32, i32) {
    %c0_i32 = arith.constant 0 : i32
    %c0_i32_0 = arith.constant 0 : i32
    %c0_i32_1 = arith.constant 0 : i32
    return %c0_i32, %c0_i32_0 : i32, i32
  }
  func.func @transform_7(%arg0: i32) -> (i32, i32) {
    %c0_i32 = arith.constant 0 : i32
    %c0_i32_0 = arith.constant 0 : i32
    %c0_i32_1 = arith.constant 0 : i32
    return %c0_i32, %c0_i32_0 : i32, i32
  }
  func.func @transform_8(%arg0: i32) -> (i32, i32) {
    %c0_i32 = arith.constant 0 : i32
    %c0_i32_0 = arith.constant 0 : i32
    return %arg0, %c0_i32 : i32, i32
  }
}

</mosaic_0001>

<bundles_post_ra>
// kernel: tpu_custom_call.1
= control target key start
LH: loop header
LB: loop body
LE: loop exit
PB: predicated region body
PF: predicated region fallthrough
CT: control target
= control target key end

     0   :  { %s1491_s0 = inlined_call_operand.hbm [shape: f32[16,32], index: 0, kind: input, shape index: {}]   ;;  %s1492_s1 = inlined_call_operand.hbm [shape: f32[16,32], index: 1, kind: input, shape index: {}]   ;;  %s1493_s2 = inlined_call_operand.hbm [shape: f32[32,32], index: 2, kind: input, shape index: {}]   ;;  %s1494_s3 = inlined_call_operand.vmem [shape: f32[1,32], index: 3, kind: input, shape index: {}]   ;;  %s1495_s4 = inlined_call_operand.hbm [shape: f32[32,32], index: 4, kind: input, shape index: {}]   ;;  %s1496_s5 = inlined_call_operand.vmem [shape: f32[1,32], index: 5, kind: input, shape index: {}]   ;;  %s1497_s6 = inlined_call_operand.hbm [shape: f32[32,128], index: 6, kind: input, shape index: {}]   ;;  %s1498_s7 = inlined_call_operand.vmem [shape: f32[1,128], index: 7, kind: input, shape index: {}]   ;;  %s1499_s8 = inlined_call_operand.hbm [shape: f32[16,128], index: 8, kind: output, shape index: {}]  }
   0x1   :  { %1505 = sst [smem:[#allocation19_spill]] %s1493_s2 }
   0x2   :  { %1506 = sst [smem:[#allocation20_spill]] %s1495_s4 }
   0x3   :  { %1507 = sst [smem:[#allocation21_spill]] %s1497_s6 }
   0x4   :  { %13 = vsyncpa [#allocation3], 0 }
   0x5   :  { %15 = vsyncpa [#allocation3 + $0x1], 0 }
   0x6   :  { %16 = vsyncpa [#allocation6], 0 }
   0x7   :  { %18 = vsyncpa [#allocation6 + $0x1], 0 }
   0x8   :  { %19 = vsyncpa [#allocation9], 0 }
   0x9   :  { %20 = vsyncpa [#allocation4], 0 }
   0xa   :  { %22 = vsyncpa [#allocation4 + $0x1], 0  ;;  %s1247_s27 = smov 0   ;;  %s1249_s28 = smov 0  }
   0xb   :  { %s1251_s29 = smov 0   ;;  %s1253_s30 = smov 0  }
   0xc LB: > { %1508 = sst [smem:[#allocation17_spill]] %s1186_s29  ;;  %s1268_s9 = sadd.s32 4294967295, %s1190_s30   ;;  %s1190_s30 = sphi %s1253_s30, %s1533_s30   ;;  %s1186_s29 = sphi %s1251_s29, %s1530_s29   ;;  %s1182_s28 = sphi %s1249_s28, %s1532_s28   ;;  %s1178_s27 = sphi %s1247_s27, %s1531_s27  }
   0xd   : > { %s812_s10 = sadd.s32 4294967294, %s1190_s30   ;;  %p48_p0 = scmp.ne.s32.totalorder %s1182_s28, %s1178_s27 }
   0xe   : > { %p1500_p1 = scmp.eq.s32.totalorder %s1268_s9, 0  ;;  %p230_p3 = scmp.eq.s32.totalorder %s812_s10, 1 }
   0xf   : > { %p813_p5 = scmp.ge.s32.totalorder %s1190_s30, 1  ;;  %p237_p7 = scmp.lt.s32.totalorder %s1190_s30, 3 }
  0x10   : > { %p1277_p4 = por %p1500_p1, %p48_p0  ;;  %p1282_p6 = por %p230_p3, %p48_p0 }
  0x11   : > { %p1287_p8 = pnand %p813_p5, %p237_p7  ;;  %s1192_s14 = smov [#allocation7]  }
  0x12   : > { %s1509_s11 = scalar_select %p1277_p4, 1, 0 }
  0x13   : > { %s1510_s12 = scalar_select %p1282_p6, 1, 0 }
  0x14   : > { %s1511_s13 = scalar_select %p1287_p8, 1, 0 }
  0x15   : > { %s249_s15 = sshll.u32 %s1192_s14, 4  ;;  %p906_p9 = pneg %p1287_p8  ;;  %s250_s15 = int_to_ptr.vmem [resolvable:$true] %s249_s15 }
  0x16   : > { %s1193_s17 = smov [#allocation8]   ;;  %s1194_s19 = smov [#allocation10]  }
  0x17   : > { %p1296_p11 = pnand %p906_p9, %p1500_p1  ;;  %s265_s18 = sshll.u32 %s1193_s17, 4  ;;  %s266_s18 = int_to_ptr.vmem [resolvable:$true] %s265_s18 }
  0x18   : > { %s281_s20 = sshll.u32 %s1194_s19, 4  ;;  %s991_s21 = scalar_lea.vmem %s250_s15, 512  ;;  %s282_s20 = int_to_ptr.vmem [resolvable:$true] %s281_s20 }
  0x19   : > { %p982_p12 = pneg %p1296_p11  ;;  %p992_p13 = scmp.ne.s32.totalorder %s250_s15, %s991_s21 }
  0x1a   : > { %p999_p5 = scmp.lt.s32.totalorder %s250_s15, %s250_s15  ;;  %p1000_p7 = scmp.lt.s32.totalorder %s991_s21, %s991_s21 }
  0x1b   : > { %p994_p0 = pnand %p992_p13, %p982_p12 }
  0x1c   : > { %p1001_p9 = por %p1000_p7, %p999_p5 }
  0x1d   : > { %p995_p3 = pneg %p994_p0 }
  0x1f   : > { %p1002_p10 = pnand %p1001_p9, %p995_p3 }
  0x21   : > { %1005 = shalt.err (!%p1002_p10)
}
  0x22   : > { %s1195_s22 = smov 128   ;;  %s1196_s23 = smov 8  }
  0x23   : > { %s1513_s2 = sld [smem:[#allocation19_spill]]  ;;  %s1017_s26 = scalar_lea.vmem %s266_s18, 512 }
  0x24   : > { %p1018_p1 = scmp.ne.s32.totalorder %s266_s18, %s1017_s26  ;;  %p1025_p2 = scmp.lt.s32.totalorder %s266_s18, %s266_s18 }
  0x25   : > { %p1026_p6 = scmp.lt.s32.totalorder %s1017_s26, %s1017_s26 }
  0x26   : > { %p1020_p13 = pnand %p1018_p1, %p982_p12 }
  0x27   : > { %p1027_p5 = por %p1026_p6, %p1025_p2 }
  0x28   : > { %p1021_p0 = pneg %p1020_p13 }
  0x29   : > { %909 = dma.hbm_to_vmem [thread:$0]  (!%p1296_p11), %s1513_s2, 512, %s250_s15, [#allocation6], %s1195_s22, %s1195_s22, %s1196_s23  }
  0x2a   : > { %p1028_p3 = pnand %p1027_p5, %p1021_p0 }
  0x2c   : > { %1031 = shalt.err (!%p1028_p3)
}
  0x2d   : > { %s1514_s4 = sld [smem:[#allocation20_spill]]  ;;  %s1043_s15 = scalar_lea.vmem %s282_s20, 512 }
  0x2e   : > { %p1044_p10 = scmp.ne.s32.totalorder %s282_s20, %s1043_s15  ;;  %p1051_p9 = scmp.lt.s32.totalorder %s282_s20, %s282_s20 }
  0x2f   : > { %p1052_p13 = scmp.lt.s32.totalorder %s1043_s15, %s1043_s15 }
  0x30   : > { %p1046_p7 = pnand %p1044_p10, %p982_p12 }
  0x31   : > { %p1053_p4 = por %p1052_p13, %p1051_p9 }
  0x32   : > { %p1047_p1 = pneg %p1046_p7 }
  0x33   : > { %912 = dma.hbm_to_vmem [thread:$0]  (!%p1296_p11), %s1514_s4, 512, %s266_s18, [#allocation9], %s1195_s22, %s1195_s22, %s1196_s23  }
  0x34   : > { %p1054_p2 = pnand %p1053_p4, %p1047_p1 }
  0x36   : > { %1057 = shalt.err (!%p1054_p2)
}
  0x37   : > { %s1515_s6 = sld [smem:[#allocation21_spill]]  ;;  %s1327_s18 = sadd.s32 1, %s1190_s30  }
  0x38   : > { %s32_s21 = ssub.s32 %s1190_s30, %s1327_s18  ;;  %s35_s16 = sadd.s32 1, %s1186_s29 }
  0x39   : > { %p33_p4 = scmp.eq.s32.totalorder %s32_s21, 0  ;;  %p42_p6 = scmp.ne.s32.totalorder %s1186_s29, %s1182_s28 }
  0x3a   : > { %p43_p12 = scmp.eq.s32.totalorder %s1190_s30, 0  ;;  %p930_p0 = scmp.lt.s32.totalorder %s1190_s30, 2 }
  0x3b   : > { %s1337_s24 = scalar_select %p33_p4, %s1186_s29, %s35_s16  }
  0x3c   : > { %p44_p5 = por %p43_p12, %p42_p6  ;;  %p1517_p3 = scmp.eq.s32.totalorder %s1268_s9, 1 }
  0x3d   : > { %915 = dma.hbm_to_vmem [thread:$0]  (!%p1296_p11), %s1515_s6, 512, %s282_s20, [#allocation9], %s1195_s22, %s1195_s22, %s1196_s23  }
  0x3e   : > { %1516 = sst [smem:[#allocation18_spill]] %s1337_s24  ;;  %p1341_p10 = por %p1517_p3, %p42_p6 }
  0x3f   : > { %s298_s26 = sand.u32 1, %s1186_s29   ;;  %s819_s10 = sshll.u32 %s1190_s30, 7 }
  0x40   : > { %s1518_s25 = scalar_select %p1341_p10, 1, 0 }
  0x41   : > { %s1347_s20 = sshll.u32 %s298_s26, 3  ;;  %s1352_s14 = scalar_lea.hbm %s1491_s0, %s819_s10 }
  0x42   : > { %s302_s15 = scalar_lea.vmem [#allocation2], %s1347_s20  ;;  %p1355_p11 = pnand %p930_p0, %p44_p5 }
  0x43   : > { %s309_s17 = sshll.u32 %s302_s15, 4  ;;  %s1362_s2 = scalar_lea.hbm %s1492_s1, %s819_s10  ;;  %s310_s17 = int_to_ptr.vmem [resolvable:$true] %s309_s17 }
  0x44   : > { %s299_s22 = scalar_lea.sflag [#allocation3], %s298_s26  ;;  %s1058_s23 = scalar_lea.hbm %s1352_s14, 128 }
  0x45   : > { %p1059_p7 = scmp.ne.s32.totalorder %s1352_s14, %s1058_s23  ;;  %p1060_p1 = pneg %p1355_p11 }
  0x46   : > { %s1063_s6 = scalar_lea.hbm %s1491_s0, 256  ;;  %p1064_p2 = scmp.lt.s32.totalorder %s1352_s14, %s1491_s0 }
  0x47   : > { %p1061_p9 = pnand %p1060_p1, %p1059_p7  ;;  %p1065_p4 = scmp.lt.s32.totalorder %s1063_s6, %s1058_s23 }
  0x49   : > { %p1062_p13 = pneg %p1061_p9  ;;  %p1066_p6 = por %p1065_p4, %p1064_p2 }
  0x4b   : > { %p1067_p12 = pnand %p1066_p6, %p1062_p13 }
  0x4d   : > { %1070 = shalt.err (!%p1067_p12)
}
  0x4e   : > { %s1071_s26 = scalar_lea.vmem %s310_s17, 128  ;;  %s1197_s10 = smov [#allocation2]  }
  0x4f   : > { %p1072_p0 = scmp.ne.s32.totalorder %s310_s17, %s1071_s26  ;;  %s1076_s21 = sshll.u32 %s1197_s10, 4  ;;  %s1077_s21 = int_to_ptr.vmem [resolvable:$false] %s1076_s21 }
  0x50   : > { %s1078_s4 = scalar_lea.vmem %s1077_s21, 256  ;;  %p1079_p7 = scmp.lt.s32.totalorder %s310_s17, %s1077_s21 }
  0x51   : > { %p1074_p5 = pnand %p1072_p0, %p1060_p1  ;;  %p1080_p9 = scmp.lt.s32.totalorder %s1078_s4, %s1071_s26 }
  0x53   : > { %p1075_p3 = pneg %p1074_p5  ;;  %p1081_p10 = por %p1080_p9, %p1079_p7 }
  0x55   : > { %p1082_p8 = pnand %p1081_p10, %p1075_p3 }
  0x57   : > { %1085 = shalt.err (!%p1082_p8)
}
  0x58   : > { %919 = dma.hbm_to_vmem [thread:$0]  (!%p1355_p11), %s1352_s14, 128, %s310_s17, %s299_s22  }
  0x59   : > { %s316_s6 = sand.u32 1, %s1190_s30   ;;  %s320_s29 = scalar_lea.vmem [#allocation5], %s1347_s20 }
  0x5a   : > { %s327_s24 = sshll.u32 %s320_s29, 4  ;;  %s317_s16 = scalar_lea.sflag [#allocation6], %s316_s6  ;;  %s328_s24 = int_to_ptr.vmem [resolvable:$true] %s327_s24 }
  0x5b   : > { %s1086_s23 = scalar_lea.hbm %s1362_s2, 128  ;;  %s1091_s10 = scalar_lea.hbm %s1492_s1, 256 }
  0x5c   : > { %p1087_p13 = scmp.ne.s32.totalorder %s1362_s2, %s1086_s23  ;;  %p1092_p2 = scmp.lt.s32.totalorder %s1362_s2, %s1492_s1 }
  0x5d   : > { %p1093_p4 = scmp.lt.s32.totalorder %s1091_s10, %s1086_s23 }
  0x5e   : > { %p1089_p8 = pnand %p1087_p13, %p1060_p1 }
  0x5f   : > { %p1094_p6 = por %p1093_p4, %p1092_p2 }
  0x60   : > { %p1090_p10 = pneg %p1089_p8 }
  0x62   : > { %p1095_p12 = pnand %p1094_p6, %p1090_p10 }
  0x64   : > { %1098 = shalt.err (!%p1095_p12)
}
  0x65   : > { %s1099_s20 = scalar_lea.vmem %s328_s24, 128  ;;  %s1198_s14 = smov [#allocation5]  }
  0x66   : > { %p1100_p0 = scmp.ne.s32.totalorder %s328_s24, %s1099_s20  ;;  %s1104_s17 = sshll.u32 %s1198_s14, 4  ;;  %s1105_s17 = int_to_ptr.vmem [resolvable:$false] %s1104_s17 }
  0x67   : > { %s1106_s22 = scalar_lea.vmem %s1105_s17, 256  ;;  %p1107_p7 = scmp.lt.s32.totalorder %s328_s24, %s1105_s17 }
  0x68   : > { %p1102_p5 = pnand %p1100_p0, %p1060_p1  ;;  %p1108_p9 = scmp.lt.s32.totalorder %s1106_s22, %s1099_s20 }
  0x6a   : > { %p1103_p3 = pneg %p1102_p5  ;;  %p1109_p13 = por %p1108_p9, %p1107_p7 }
  0x6c   : > { %p1110_p8 = pnand %p1109_p13, %p1103_p3 }
  0x6e   : > { %1113 = shalt.err (!%p1110_p8)
}
  0x6f   : > { %922 = dma.hbm_to_vmem [thread:$0]  (!%p1355_p11), %s1362_s2, 128, %s328_s24, %s317_s16  }
  0x70   : > { %p1520_p10 = scmp.ne.s32.totalorder %s1511_s13, 0 }
  0x71   : > { %s1407_s6 = sand.u32 (!%p1520_p10), 1, %s1182_s28   ;;  %p1521_p1 = scmp.ne.s32.totalorder (!%p1520_p10), %s1509_s11, 0 }
  0x72   : > { %336 = sbr.rel (%p1520_p10) target bundleno = 649 (0x289), region = 52  ;;  %s1410_s29 = sshll.u32 (!%p1520_p10), %s1407_s6, 3 }
  0x73   : > { %s339_s23 = scalar_lea.sflag (!%p1520_p10), [#allocation3], %s1407_s6  ;;  %s342_s15 = scalar_lea.vmem (!%p1520_p10), [#allocation2], %s1410_s29 }
  0x77   : > { %1157 = dma.done.wait (%p1521_p1), %s339_s23, 128  }
  0x78   : > { %1159 = vsyncadd (%p1521_p1), %s339_s23, 4294967168  ;;  %s347_s2 = sand.u32 1, %s1268_s9   ;;  %s351_s19 = scalar_lea.vmem [#allocation5], %s1410_s29 }
  0x79   : > { %s348_s13 = scalar_lea.sflag [#allocation6], %s347_s2 }
  0x7a   : > { %1161 = dma.done.wait (%p1521_p1), %s348_s13, 128  }
  0x7b   : > { %1163 = vsyncadd (%p1521_p1), %s348_s13, 4294967168  ;;  %p1522_p11 = scmp.eq.s32.totalorder %s1268_s9, 0 }
  0x7d   : > { %1165 = dma.done.wait (%p1522_p11), [#allocation6], 512   ;;  %p1523_p2 = pmov %p1522_p11 }
  0x7f   : > { %1167 = vsyncadd (%p1523_p2), [#allocation6], 4294966784  ;;  %p1524_p4 = pmov %p1523_p2 }
  0x80   : > { %p1525_p6 = pmov %p1523_p2 }
  0x81   : > { %1169 = dma.done.wait (%p1524_p4), [#allocation9], 1024  }
  0x82   : > { %1171 = vsyncadd (%p1525_p6), [#allocation9], 4294966272  ;;  %v1199_v0 = vmov 0.0   ;;  %vm1200_vm0 = vmmov 0   ;;  %vm421_vm1 = vcmask 261120   ;;  %v401_v1 = vld [vmem:[%s342_s15] sm:$0xff] }
  0x83   : > { %866 = vmatprep.subr.mxu1 %v1199_v0  ;;  %855 = vmatprep.subr.mxu0 %v1199_v0  ;;  %v498_v2 = vld [vmem:[#allocation8 + $0x18] sm:$0xff]  ;;  %v576_v4 = vsel %vm421_vm1, %v401_v1, 0.0  ;;  %v497_v5 = vld [vmem:[#allocation8 + $0x10] sm:$0xff]  ;;  %v496_v7 = vld [vmem:[#allocation8 + $0x8] sm:$0xff]  ;;  %s837_s4 = sshll.u32 %s1268_s9, 7  ;;  %s400_s20 = scalar_lea.vmem [#allocation11], %s1410_s29 }
  0x84   : > { %874 = vmatprep.mubr.msk.f32.mxu1 %vm1200_vm0, %v1199_v0  ;;  %863 = vmatprep.mubr.msk.f32.mxu0 %vm1200_vm0, %v1199_v0  ;;  %v413_v3 = vld [vmem:[#allocation7 + $0x18] sm:$0xff]  ;;  %v412_v6 = vld [vmem:[#allocation7 + $0x10] sm:$0xff]  ;;  %v411_v9 = vld [vmem:[#allocation7 + $0x8] sm:$0xff]  ;;  %s691_s14 = sshll.u32 %s400_s20, 4  ;;  %s1454_s23 = scalar_lea.hbm %s1499_s8, %s837_s4  ;;  %s692_s14 = int_to_ptr.vmem [resolvable:$true] %s691_s14 }
  0x85   : > { %867 = vmatpush3.msra.mxu1 %v498_v2  ;;  %856 = vmatpush3.msra.mxu0 %v413_v3  ;;  %v402_v8 = vld [vmem:[%s351_s19] sm:$0xff]  ;;  %v495_v11 = vld [vmem:[#allocation8] sm:$0xff]  ;;  %v593_v24 = vld [vmem:[#allocation10 + $0x8] sm:$0xff]  ;;  %s678_s15 = scalar_lea.sflag [#allocation4], %s1407_s6  ;;  %s1114_s2 = scalar_lea.vmem %s692_s14, 128 }
  0x86   : > { %577 = vadd.xlane.f32.xlu0 %v576_v4  ;;  %868 = vmatprep.subr.mxu1 %v1199_v0  ;;  %v829_v10 = vmul.f32 -1.442695, %v402_v8  ;;  %v410_v12 = vld [vmem:[#allocation7] sm:$0xff]  ;;  %v595_v22 = vld [vmem:[#allocation10 + $0x18] sm:$0xff]  ;;  %v594_v23 = vld [vmem:[#allocation10 + $0x10] sm:$0xff]  ;;  %p1115_p12 = scmp.ne.s32.totalorder %s692_s14, %s1114_s2  ;;  %p1526_p0 = scmp.ne.s32.totalorder %s1518_s25, 0 }
  0x87   : > { %869 = vmatpush3.msra.mxu1 %v497_v5  ;;  %857 = vmatprep.subr.mxu0 %v1199_v0  ;;  %v592_v25 = vld [vmem:[#allocation10] sm:$0xff]  ;;  %s1201_s13 = smov [#allocation11]  }
  0x88   : > { %870 = vmatprep.subr.mxu1 %v1199_v0  ;;  %858 = vmatpush3.msra.mxu0 %v412_v6  ;;  %974 = vpow2.f32 %v829_v10  ;;  %v832_v33 = vld [vmem:[%s1496_s5] ss:$0 sm:$0xff]  ;;  %p1116_p5 = pnand %p1115_p12, %p1526_p0  ;;  %s1118_s9 = sshll.u32 %s1201_s13, 4  ;;  %s1119_s9 = int_to_ptr.vmem [resolvable:$false] %s1118_s9 }
  0x89   : > { %871 = vmatpush3.msra.mxu1 %v496_v7  ;;  %859 = vmatprep.subr.mxu0 %v1199_v0  ;;  %v830_v34 = vld [vmem:[%s1494_s3] ss:$0 sm:$0xff]  ;;  %s1120_s29 = scalar_lea.vmem %s1119_s9, 256  ;;  %p1121_p7 = scmp.lt.s32.totalorder %s692_s14, %s1119_s9 }
  0x8a   : > { %872 = vmatprep.subr.mxu1 %v1199_v0  ;;  %860 = vmatpush3.msra.mxu0 %v411_v9  ;;  %v834_v41 = vld [vmem:[%s1498_s7] ss:$0 sm:$0xff]  ;;  %p1117_p3 = pneg %p1116_p5  ;;  %p1122_p9 = scmp.lt.s32.totalorder %s1120_s29, %s1114_s2 }
  0x8b   : > { %873 = vmatpush3.msra.mxu1 %v495_v11  ;;  %861 = vmatprep.subr.mxu0 %v1199_v0 }
  0x8c   : > { %862 = vmatpush3.msra.mxu0 %v410_v12  ;;  %p1123_p13 = por %p1122_p9, %p1121_p7 }
  0x8d   : > { %877 = vmatprep.subr.mxu0 %v1199_v0 }
  0x8e   : > { %p1124_p8 = pnand %p1123_p13, %p1117_p3 }
  0x95   : > { %v975_v13 = vpop.eup %974 }
  0x96   : > { %v406_v14 = vadd.f32 1.0, %v975_v13 }
  0x98   : > { %976 = vrcp.f32 %v406_v14 }
  0xa5   : > { %v977_v15 = vpop.eup %976 }
  0xa6   : > { %v409_v16 = vmul.f32 %v977_v15, %v402_v8 }
  0xa8   : > { %875 = vmatmul.mubr.msk.f32.vlgmr.msra.gmra.mxu1 %vm421_vm1, %v409_v16  ;;  %864 = vmatmul.mubr.msk.f32.vlgmr.msra.gmra.mxu0 %vm421_vm1, %v409_v16 }
  0xa9   : > { %885 = vmatprep.mubr.msk.f32.mxu0 %vm1200_vm0, %v1199_v0  ;;  %878 = vmatpush3.msra.mxu0 %v595_v22 }
  0xaa   : > { %879 = vmatprep.subr.mxu0 %v1199_v0 }
  0xab   : > { %880 = vmatpush3.msra.mxu0 %v594_v23 }
  0xac   : > { %881 = vmatprep.subr.mxu0 %v1199_v0 }
  0xad   : > { %882 = vmatpush3.msra.mxu0 %v593_v24 }
  0xae   : > { %883 = vmatprep.subr.mxu0 %v1199_v0 }
  0xaf   : > { %884 = vmatpush3.msra.mxu0 %v592_v25 }
 0x10f   : > { %v578_v17 = vpop.xlane.xlu0 %577 }
 0x110   : > { %v580_v18 = vmul.f32 0.03125, %v578_v17 }
 0x112   : > { %v581_v19 = vsub.f32 %v401_v1, %v580_v18 }
 0x114   : > { %v582_v20 = vmul.f32 %v581_v19, %v581_v19 }
 0x116   : > { %v583_v21 = vsel %vm421_vm1, %v582_v20, 0.0 }
 0x117   : > { %584 = vadd.xlane.f32.xlu0 %v583_v21 }
 0x168   : > { %v572_v26 = vpop.f32.mrf.mxu1  ;;  %v491_v27 = vpop.f32.mrf.mxu0 }
 0x169   : > { %v573_v35 = vadd.f32 %v832_v33, %v572_v26  ;;  %v492_v38 = vadd.f32 %v830_v34, %v491_v27 }
 0x16a   : > { %v876_v28 = vpop.f32.mrf.mxu1  ;;  %v865_v29 = vpop.f32.mrf.mxu0 }
 0x1a0   : > { %v585_v30 = vpop.xlane.xlu0 %584 }
 0x1a1   : > { %v586_v31 = vmul.f32 0.03125, %v585_v30 }
 0x1a3   : > { %v587_v32 = vadd.f32 1e-06, %v586_v31 }
 0x1a5   : > { %978 = vrsqrt.f32 %v587_v32 }
 0x1b2   : > { %v979_v36 = vpop.eup %978 }
 0x1b3   : > { %v589_v37 = vmul.f32 %v979_v36, %v581_v19 }
 0x1b5   : > { %v590_v39 = vmul.f32 %v589_v37, %v573_v35 }
 0x1b7   : > { %v591_v40 = vadd.f32 %v590_v39, %v492_v38 }
 0x1b9   : > { %886 = vmatmul.mubr.msk.f32.vlgmr.msra.gmra.mxu0 %vm421_vm1, %v591_v40 }
 0x279   : > { %v672_v42 = vpop.f32.mrf.mxu0 }
 0x27a   : > { %v673_v43 = vadd.f32 %v834_v41, %v672_v42 }
 0x27b   : > { %v887_v44 = vpop.f32.mrf.mxu0 }
 0x27c   : > { %676 = vst [vmem:[%s400_s20] sm:$0xff] %v673_v43 }
 0x27d   : > { %1127 = shalt.err (!%p1124_p8)
}
 0x27e   : > { %s1128_s19 = scalar_lea.hbm %s1454_s23, 128  ;;  %s1132_s24 = scalar_lea.hbm %s1499_s8, 256 }
 0x27f   : > { %p1129_p10 = scmp.ne.s32.totalorder %s1454_s23, %s1128_s19  ;;  %p1133_p2 = scmp.lt.s32.totalorder %s1454_s23, %s1499_s8 }
 0x280   : > { %p1134_p4 = scmp.lt.s32.totalorder %s1132_s24, %s1128_s19 }
 0x281   : > { %p1130_p1 = pnand %p1129_p10, %p1526_p0 }
 0x282   : > { %p1135_p6 = por %p1134_p4, %p1133_p2 }
 0x283   : > { %p1131_p11 = pneg %p1130_p1 }
 0x285   : > { %p1136_p12 = pnand %p1135_p6, %p1131_p11 }
 0x287   : > { %1139 = shalt.err (!%p1136_p12)
}
 0x288   : > { %904 = dma.vmem_to_hbm [thread:$0]  (%p1526_p0), %s692_s14, 128, %s1454_s23, %s678_s15  }
 0x289 PF: > { %s703_s10 = sand.u32 1, %s1178_s27   ;;  %p1527_p5 = scmp.ne.s32.totalorder %s1510_s12, 0 }
 0x28a   : > { %p1528_p3 = scmp.ge.s32.totalorder %s1190_s30, 2  ;;  %s704_s21 = scalar_lea.sflag [#allocation4], %s703_s10 }
 0x28c   : > { %p924_p7 = pnand %p1528_p3, %p1527_p5 }
 0x28e   : > { %p925_p9 = pneg %p924_p7 }
 0x290   : > { %1173 = dma.done.wait (%p925_p9), %s704_s21, 128  }
 0x291   : > { %1175 = vsyncadd (%p925_p9), %s704_s21, 4294967168  ;;  %s1529_s4 = sld [smem:[#allocation17_spill]]  ;;  %p25_p13 = scmp.ge.s32.totalorder %s1327_s18, 4  }
 0x292   : > { %s1530_s29 = sld [smem:[#allocation18_spill]]  ;;  %s1531_s27 = smov %s1182_s28 }
 0x293   : > { %s1533_s30 = smov %s1327_s18  ;;  %27 = sbr.rel (!%p25_p13) target bundleno = 12 (0xc), region = 122 }
 0x297   : > { %s1532_s28 = smov %s1529_s4 }
 0x298   :  { %709 = vsyncpa [#allocation3], 1 }
 0x299   :  { %711 = vsyncpa [#allocation3 + $0x1], 1 }
 0x29a   :  { %712 = vsyncpa [#allocation6], 1 }
 0x29b   :  { %714 = vsyncpa [#allocation6 + $0x1], 1 }
 0x29c   :  { %715 = vsyncpa [#allocation9], 1 }
 0x29d   :  { %716 = vsyncpa [#allocation4], 1 }
 0x29e   :  { %718 = vsyncpa [#allocation4 + $0x1], 1 }

// kernel: tpu_custom_call.1
= control target key start
LH: loop header
LB: loop body
LE: loop exit
PB: predicated region body
PF: predicated region fallthrough
CT: control target
= control target key end

     0   :  { %s1491_s0 = inlined_call_operand.hbm [shape: f32[16,32], index: 0, kind: input, shape index: {}]   ;;  %s1492_s1 = inlined_call_operand.hbm [shape: f32[16,32], index: 1, kind: input, shape index: {}]   ;;  %s1493_s2 = inlined_call_operand.hbm [shape: f32[32,32], index: 2, kind: input, shape index: {}]   ;;  %s1494_s3 = inlined_call_operand.vmem [shape: f32[1,32], index: 3, kind: input, shape index: {}]   ;;  %s1495_s4 = inlined_call_operand.hbm [shape: f32[32,32], index: 4, kind: input, shape index: {}]   ;;  %s1496_s5 = inlined_call_operand.vmem [shape: f32[1,32], index: 5, kind: input, shape index: {}]   ;;  %s1497_s6 = inlined_call_operand.hbm [shape: f32[32,128], index: 6, kind: input, shape index: {}]   ;;  %s1498_s7 = inlined_call_operand.vmem [shape: f32[1,128], index: 7, kind: input, shape index: {}]   ;;  %s1499_s8 = inlined_call_operand.hbm [shape: f32[16,128], index: 8, kind: output, shape index: {}]  }
   0x1   :  { %1505 = sst [smem:[#allocation19_spill]] %s1493_s2 }
   0x2   :  { %1506 = sst [smem:[#allocation20_spill]] %s1495_s4 }
   0x3   :  { %1507 = sst [smem:[#allocation21_spill]] %s1497_s6 }
   0x4   :  { %13 = vsyncpa [#allocation3], 0 }
   0x5   :  { %15 = vsyncpa [#allocation3 + $0x1], 0 }
   0x6   :  { %16 = vsyncpa [#allocation6], 0 }
   0x7   :  { %18 = vsyncpa [#allocation6 + $0x1], 0 }
   0x8   :  { %19 = vsyncpa [#allocation9], 0 }
   0x9   :  { %20 = vsyncpa [#allocation4], 0 }
   0xa   :  { %22 = vsyncpa [#allocation4 + $0x1], 0  ;;  %s1247_s27 = smov 0   ;;  %s1249_s28 = smov 0  }
   0xb   :  { %s1251_s29 = smov 0   ;;  %s1253_s30 = smov 0  }
   0xc LB: > { %1508 = sst [smem:[#allocation17_spill]] %s1186_s29  ;;  %s1268_s9 = sadd.s32 4294967295, %s1190_s30   ;;  %s1190_s30 = sphi %s1253_s30, %s1533_s30   ;;  %s1186_s29 = sphi %s1251_s29, %s1530_s29   ;;  %s1182_s28 = sphi %s1249_s28, %s1532_s28   ;;  %s1178_s27 = sphi %s1247_s27, %s1531_s27  }
   0xd   : > { %s812_s10 = sadd.s32 4294967294, %s1190_s30   ;;  %p48_p0 = scmp.ne.s32.totalorder %s1182_s28, %s1178_s27 }
   0xe   : > { %p1500_p1 = scmp.eq.s32.totalorder %s1268_s9, 0  ;;  %p230_p3 = scmp.eq.s32.totalorder %s812_s10, 1 }
   0xf   : > { %p813_p5 = scmp.ge.s32.totalorder %s1190_s30, 1  ;;  %p237_p7 = scmp.lt.s32.totalorder %s1190_s30, 3 }
  0x10   : > { %p1277_p4 = por %p1500_p1, %p48_p0  ;;  %p1282_p6 = por %p230_p3, %p48_p0 }
  0x11   : > { %p1287_p8 = pnand %p813_p5, %p237_p7  ;;  %s1192_s14 = smov [#allocation7]  }
  0x12   : > { %s1509_s11 = scalar_select %p1277_p4, 1, 0 }
  0x13   : > { %s1510_s12 = scalar_select %p1282_p6, 1, 0 }
  0x14   : > { %s1511_s13 = scalar_select %p1287_p8, 1, 0 }
  0x15   : > { %s249_s15 = sshll.u32 %s1192_s14, 4  ;;  %p906_p9 = pneg %p1287_p8  ;;  %s250_s15 = int_to_ptr.vmem [resolvable:$true] %s249_s15 }
  0x16   : > { %s1193_s17 = smov [#allocation8]   ;;  %s1194_s19 = smov [#allocation10]  }
  0x17   : > { %p1296_p11 = pnand %p906_p9, %p1500_p1  ;;  %s265_s18 = sshll.u32 %s1193_s17, 4  ;;  %s266_s18 = int_to_ptr.vmem [resolvable:$true] %s265_s18 }
  0x18   : > { %s281_s20 = sshll.u32 %s1194_s19, 4  ;;  %s991_s21 = scalar_lea.vmem %s250_s15, 512  ;;  %s282_s20 = int_to_ptr.vmem [resolvable:$true] %s281_s20 }
  0x19   : > { %p982_p12 = pneg %p1296_p11  ;;  %p992_p13 = scmp.ne.s32.totalorder %s250_s15, %s991_s21 }
  0x1a   : > { %p999_p5 = scmp.lt.s32.totalorder %s250_s15, %s250_s15  ;;  %p1000_p7 = scmp.lt.s32.totalorder %s991_s21, %s991_s21 }
  0x1b   : > { %p994_p0 = pnand %p992_p13, %p982_p12 }
  0x1c   : > { %p1001_p9 = por %p1000_p7, %p999_p5 }
  0x1d   : > { %p995_p3 = pneg %p994_p0 }
  0x1f   : > { %p1002_p10 = pnand %p1001_p9, %p995_p3 }
  0x21   : > { %1005 = shalt.err (!%p1002_p10)
}
  0x22   : > { %s1195_s22 = smov 128   ;;  %s1196_s23 = smov 8  }
  0x23   : > { %s1513_s2 = sld [smem:[#allocation19_spill]]  ;;  %s1017_s26 = scalar_lea.vmem %s266_s18, 512 }
  0x24   : > { %p1018_p1 = scmp.ne.s32.totalorder %s266_s18, %s1017_s26  ;;  %p1025_p2 = scmp.lt.s32.totalorder %s266_s18, %s266_s18 }
  0x25   : > { %p1026_p6 = scmp.lt.s32.totalorder %s1017_s26, %s1017_s26 }
  0x26   : > { %p1020_p13 = pnand %p1018_p1, %p982_p12 }
  0x27   : > { %p1027_p5 = por %p1026_p6, %p1025_p2 }
  0x28   : > { %p1021_p0 = pneg %p1020_p13 }
  0x29   : > { %909 = dma.hbm_to_vmem [thread:$0]  (!%p1296_p11), %s1513_s2, 512, %s250_s15, [#allocation6], %s1195_s22, %s1195_s22, %s1196_s23  }
  0x2a   : > { %p1028_p3 = pnand %p1027_p5, %p1021_p0 }
  0x2c   : > { %1031 = shalt.err (!%p1028_p3)
}
  0x2d   : > { %s1514_s4 = sld [smem:[#allocation20_spill]]  ;;  %s1043_s15 = scalar_lea.vmem %s282_s20, 512 }
  0x2e   : > { %p1044_p10 = scmp.ne.s32.totalorder %s282_s20, %s1043_s15  ;;  %p1051_p9 = scmp.lt.s32.totalorder %s282_s20, %s282_s20 }
  0x2f   : > { %p1052_p13 = scmp.lt.s32.totalorder %s1043_s15, %s1043_s15 }
  0x30   : > { %p1046_p7 = pnand %p1044_p10, %p982_p12 }
  0x31   : > { %p1053_p4 = por %p1052_p13, %p1051_p9 }
  0x32   : > { %p1047_p1 = pneg %p1046_p7 }
  0x33   : > { %912 = dma.hbm_to_vmem [thread:$0]  (!%p1296_p11), %s1514_s4, 512, %s266_s18, [#allocation9], %s1195_s22, %s1195_s22, %s1196_s23  }
  0x34   : > { %p1054_p2 = pnand %p1053_p4, %p1047_p1 }
  0x36   : > { %1057 = shalt.err (!%p1054_p2)
}
  0x37   : > { %s1515_s6 = sld [smem:[#allocation21_spill]]  ;;  %s1327_s18 = sadd.s32 1, %s1190_s30  }
  0x38   : > { %s32_s21 = ssub.s32 %s1190_s30, %s1327_s18  ;;  %s35_s16 = sadd.s32 1, %s1186_s29 }
  0x39   : > { %p33_p4 = scmp.eq.s32.totalorder %s32_s21, 0  ;;  %p42_p6 = scmp.ne.s32.totalorder %s1186_s29, %s1182_s28 }
  0x3a   : > { %p43_p12 = scmp.eq.s32.totalorder %s1190_s30, 0  ;;  %p930_p0 = scmp.lt.s32.totalorder %s1190_s30, 2 }
  0x3b   : > { %s1337_s24 = scalar_select %p33_p4, %s1186_s29, %s35_s16  }
  0x3c   : > { %p44_p5 = por %p43_p12, %p42_p6  ;;  %p1517_p3 = scmp.eq.s32.totalorder %s1268_s9, 1 }
  0x3d   : > { %915 = dma.hbm_to_vmem [thread:$0]  (!%p1296_p11), %s1515_s6, 512, %s282_s20, [#allocation9], %s1195_s22, %s1195_s22, %s1196_s23  }
  0x3e   : > { %1516 = sst [smem:[#allocation18_spill]] %s1337_s24  ;;  %p1341_p10 = por %p1517_p3, %p42_p6 }
  0x3f   : > { %s298_s26 = sand.u32 1, %s1186_s29   ;;  %s819_s10 = sshll.u32 %s1190_s30, 7 }
  0x40   : > { %s1518_s25 = scalar_select %p1341_p10, 1, 0 }
  0x41   : > { %s1347_s20 = sshll.u32 %s298_s26, 3  ;;  %s1352_s14 = scalar_lea.hbm %s1491_s0, %s819_s10 }
  0x42   : > { %s302_s15 = scalar_lea.vmem [#allocation2], %s1347_s20  ;;  %p1355_p11 = pnand %p930_p0, %p44_p5 }
  0x43   : > { %s309_s17 = sshll.u32 %s302_s15, 4  ;;  %s1362_s2 = scalar_lea.hbm %s1492_s1, %s819_s10  ;;  %s310_s17 = int_to_ptr.vmem [resolvable:$true] %s309_s17 }
  0x44   : > { %s299_s22 = scalar_lea.sflag [#allocation3], %s298_s26  ;;  %s1058_s23 = scalar_lea.hbm %s1352_s14, 128 }
  0x45   : > { %p1059_p7 = scmp.ne.s32.totalorder %s1352_s14, %s1058_s23  ;;  %p1060_p1 = pneg %p1355_p11 }
  0x46   : > { %s1063_s6 = scalar_lea.hbm %s1491_s0, 256  ;;  %p1064_p2 = scmp.lt.s32.totalorder %s1352_s14, %s1491_s0 }
  0x47   : > { %p1061_p9 = pnand %p1060_p1, %p1059_p7  ;;  %p1065_p4 = scmp.lt.s32.totalorder %s1063_s6, %s1058_s23 }
  0x49   : > { %p1062_p13 = pneg %p1061_p9  ;;  %p1066_p6 = por %p1065_p4, %p1064_p2 }
  0x4b   : > { %p1067_p12 = pnand %p1066_p6, %p1062_p13 }
  0x4d   : > { %1070 = shalt.err (!%p1067_p12)
}
  0x4e   : > { %s1071_s26 = scalar_lea.vmem %s310_s17, 128  ;;  %s1197_s10 = smov [#allocation2]  }
  0x4f   : > { %p1072_p0 = scmp.ne.s32.totalorder %s310_s17, %s1071_s26  ;;  %s1076_s21 = sshll.u32 %s1197_s10, 4  ;;  %s1077_s21 = int_to_ptr.vmem [resolvable:$false] %s1076_s21 }
  0x50   : > { %s1078_s4 = scalar_lea.vmem %s1077_s21, 256  ;;  %p1079_p7 = scmp.lt.s32.totalorder %s310_s17, %s1077_s21 }
  0x51   : > { %p1074_p5 = pnand %p1072_p0, %p1060_p1  ;;  %p1080_p9 = scmp.lt.s32.totalorder %s1078_s4, %s1071_s26 }
  0x53   : > { %p1075_p3 = pneg %p1074_p5  ;;  %p1081_p10 = por %p1080_p9, %p1079_p7 }
  0x55   : > { %p1082_p8 = pnand %p1081_p10, %p1075_p3 }
  0x57   : > { %1085 = shalt.err (!%p1082_p8)
}
  0x58   : > { %919 = dma.hbm_to_vmem [thread:$0]  (!%p1355_p11), %s1352_s14, 128, %s310_s17, %s299_s22  }
  0x59   : > { %s316_s6 = sand.u32 1, %s1190_s30   ;;  %s320_s29 = scalar_lea.vmem [#allocation5], %s1347_s20 }
  0x5a   : > { %s327_s24 = sshll.u32 %s320_s29, 4  ;;  %s317_s16 = scalar_lea.sflag [#allocation6], %s316_s6  ;;  %s328_s24 = int_to_ptr.vmem [resolvable:$true] %s327_s24 }
  0x5b   : > { %s1086_s23 = scalar_lea.hbm %s1362_s2, 128  ;;  %s1091_s10 = scalar_lea.hbm %s1492_s1, 256 }
  0x5c   : > { %p1087_p13 = scmp.ne.s32.totalorder %s1362_s2, %s1086_s23  ;;  %p1092_p2 = scmp.lt.s32.totalorder %s1362_s2, %s1492_s1 }
  0x5d   : > { %p1093_p4 = scmp.lt.s32.totalorder %s1091_s10, %s1086_s23 }
  0x5e   : > { %p1089_p8 = pnand %p1087_p13, %p1060_p1 }
  0x5f   : > { %p1094_p6 = por %p1093_p4, %p1092_p2 }
  0x60   : > { %p1090_p10 = pneg %p1089_p8 }
  0x62   : > { %p1095_p12 = pnand %p1094_p6, %p1090_p10 }
  0x64   : > { %1098 = shalt.err (!%p1095_p12)
}
  0x65   : > { %s1099_s20 = scalar_lea.vmem %s328_s24, 128  ;;  %s1198_s14 = smov [#allocation5]  }
  0x66   : > { %p1100_p0 = scmp.ne.s32.totalorder %s328_s24, %s1099_s20  ;;  %s1104_s17 = sshll.u32 %s1198_s14, 4  ;;  %s1105_s17 = int_to_ptr.vmem [resolvable:$false] %s1104_s17 }
  0x67   : > { %s1106_s22 = scalar_lea.vmem %s1105_s17, 256  ;;  %p1107_p7 = scmp.lt.s32.totalorder %s328_s24, %s1105_s17 }
  0x68   : > { %p1102_p5 = pnand %p1100_p0, %p1060_p1  ;;  %p1108_p9 = scmp.lt.s32.totalorder %s1106_s22, %s1099_s20 }
  0x6a   : > { %p1103_p3 = pneg %p1102_p5  ;;  %p1109_p13 = por %p1108_p9, %p1107_p7 }
  0x6c   : > { %p1110_p8 = pnand %p1109_p13, %p1103_p3 }
  0x6e   : > { %1113 = shalt.err (!%p1110_p8)
}
  0x6f   : > { %922 = dma.hbm_to_vmem [thread:$0]  (!%p1355_p11), %s1362_s2, 128, %s328_s24, %s317_s16  }
  0x70   : > { %p1520_p10 = scmp.ne.s32.totalorder %s1511_s13, 0 }
  0x71   : > { %s1407_s6 = sand.u32 (!%p1520_p10), 1, %s1182_s28   ;;  %p1521_p1 = scmp.ne.s32.totalorder (!%p1520_p10), %s1509_s11, 0 }
  0x72   : > { %336 = sbr.rel (%p1520_p10) target bundleno = 649 (0x289), region = 52  ;;  %s1410_s29 = sshll.u32 (!%p1520_p10), %s1407_s6, 3 }
  0x73   : > { %s339_s23 = scalar_lea.sflag (!%p1520_p10), [#allocation3], %s1407_s6  ;;  %s342_s15 = scalar_lea.vmem (!%p1520_p10), [#allocation2], %s1410_s29 }
  0x77   : > { %1157 = dma.done.wait (%p1521_p1), %s339_s23, 128  }
  0x78   : > { %1159 = vsyncadd (%p1521_p1), %s339_s23, 4294967168  ;;  %s347_s2 = sand.u32 1, %s1268_s9   ;;  %s351_s19 = scalar_lea.vmem [#allocation5], %s1410_s29 }
  0x79   : > { %s348_s13 = scalar_lea.sflag [#allocation6], %s347_s2 }
  0x7a   : > { %1161 = dma.done.wait (%p1521_p1), %s348_s13, 128  }
  0x7b   : > { %1163 = vsyncadd (%p1521_p1), %s348_s13, 4294967168  ;;  %p1522_p11 = scmp.eq.s32.totalorder %s1268_s9, 0 }
  0x7d   : > { %1165 = dma.done.wait (%p1522_p11), [#allocation6], 512   ;;  %p1523_p2 = pmov %p1522_p11 }
  0x7f   : > { %1167 = vsyncadd (%p1523_p2), [#allocation6], 4294966784  ;;  %p1524_p4 = pmov %p1523_p2 }
  0x80   : > { %p1525_p6 = pmov %p1523_p2 }
  0x81   : > { %1169 = dma.done.wait (%p1524_p4), [#allocation9], 1024  }
  0x82   : > { %1171 = vsyncadd (%p1525_p6), [#allocation9], 4294966272  ;;  %v1199_v0 = vmov 0.0   ;;  %vm1200_vm0 = vmmov 0   ;;  %vm421_vm1 = vcmask 261120   ;;  %v401_v1 = vld [vmem:[%s342_s15] sm:$0xff] }
  0x83   : > { %866 = vmatprep.subr.mxu1 %v1199_v0  ;;  %855 = vmatprep.subr.mxu0 %v1199_v0  ;;  %v498_v2 = vld [vmem:[#allocation8 + $0x18] sm:$0xff]  ;;  %v576_v4 = vsel %vm421_vm1, %v401_v1, 0.0  ;;  %v497_v5 = vld [vmem:[#allocation8 + $0x10] sm:$0xff]  ;;  %v496_v7 = vld [vmem:[#allocation8 + $0x8] sm:$0xff]  ;;  %s837_s4 = sshll.u32 %s1268_s9, 7  ;;  %s400_s20 = scalar_lea.vmem [#allocation11], %s1410_s29 }
  0x84   : > { %874 = vmatprep.mubr.msk.f32.mxu1 %vm1200_vm0, %v1199_v0  ;;  %863 = vmatprep.mubr.msk.f32.mxu0 %vm1200_vm0, %v1199_v0  ;;  %v413_v3 = vld [vmem:[#allocation7 + $0x18] sm:$0xff]  ;;  %v412_v6 = vld [vmem:[#allocation7 + $0x10] sm:$0xff]  ;;  %v411_v9 = vld [vmem:[#allocation7 + $0x8] sm:$0xff]  ;;  %s691_s14 = sshll.u32 %s400_s20, 4  ;;  %s1454_s23 = scalar_lea.hbm %s1499_s8, %s837_s4  ;;  %s692_s14 = int_to_ptr.vmem [resolvable:$true] %s691_s14 }
  0x85   : > { %867 = vmatpush3.msra.mxu1 %v498_v2  ;;  %856 = vmatpush3.msra.mxu0 %v413_v3  ;;  %v402_v8 = vld [vmem:[%s351_s19] sm:$0xff]  ;;  %v495_v11 = vld [vmem:[#allocation8] sm:$0xff]  ;;  %v593_v24 = vld [vmem:[#allocation10 + $0x8] sm:$0xff]  ;;  %s678_s15 = scalar_lea.sflag [#allocation4], %s1407_s6  ;;  %s1114_s2 = scalar_lea.vmem %s692_s14, 128 }
  0x86   : > { %577 = vadd.xlane.f32.xlu0 %v576_v4  ;;  %868 = vmatprep.subr.mxu1 %v1199_v0  ;;  %v829_v10 = vmul.f32 -1.442695, %v402_v8  ;;  %v410_v12 = vld [vmem:[#allocation7] sm:$0xff]  ;;  %v595_v22 = vld [vmem:[#allocation10 + $0x18] sm:$0xff]  ;;  %v594_v23 = vld [vmem:[#allocation10 + $0x10] sm:$0xff]  ;;  %p1115_p12 = scmp.ne.s32.totalorder %s692_s14, %s1114_s2  ;;  %p1526_p0 = scmp.ne.s32.totalorder %s1518_s25, 0 }
  0x87   : > { %869 = vmatpush3.msra.mxu1 %v497_v5  ;;  %857 = vmatprep.subr.mxu0 %v1199_v0  ;;  %v592_v25 = vld [vmem:[#allocation10] sm:$0xff]  ;;  %s1201_s13 = smov [#allocation11]  }
  0x88   : > { %870 = vmatprep.subr.mxu1 %v1199_v0  ;;  %858 = vmatpush3.msra.mxu0 %v412_v6  ;;  %974 = vpow2.f32 %v829_v10  ;;  %v832_v33 = vld [vmem:[%s1496_s5] ss:$0 sm:$0xff]  ;;  %p1116_p5 = pnand %p1115_p12, %p1526_p0  ;;  %s1118_s9 = sshll.u32 %s1201_s13, 4  ;;  %s1119_s9 = int_to_ptr.vmem [resolvable:$false] %s1118_s9 }
  0x89   : > { %871 = vmatpush3.msra.mxu1 %v496_v7  ;;  %859 = vmatprep.subr.mxu0 %v1199_v0  ;;  %v830_v34 = vld [vmem:[%s1494_s3] ss:$0 sm:$0xff]  ;;  %s1120_s29 = scalar_lea.vmem %s1119_s9, 256  ;;  %p1121_p7 = scmp.lt.s32.totalorder %s692_s14, %s1119_s9 }
  0x8a   : > { %872 = vmatprep.subr.mxu1 %v1199_v0  ;;  %860 = vmatpush3.msra.mxu0 %v411_v9  ;;  %v834_v41 = vld [vmem:[%s1498_s7] ss:$0 sm:$0xff]  ;;  %p1117_p3 = pneg %p1116_p5  ;;  %p1122_p9 = scmp.lt.s32.totalorder %s1120_s29, %s1114_s2 }
  0x8b   : > { %873 = vmatpush3.msra.mxu1 %v495_v11  ;;  %861 = vmatprep.subr.mxu0 %v1199_v0 }
  0x8c   : > { %862 = vmatpush3.msra.mxu0 %v410_v12  ;;  %p1123_p13 = por %p1122_p9, %p1121_p7 }
  0x8d   : > { %877 = vmatprep.subr.mxu0 %v1199_v0 }
  0x8e   : > { %p1124_p8 = pnand %p1123_p13, %p1117_p3 }
  0x95   : > { %v975_v13 = vpop.eup %974 }
  0x96   : > { %v406_v14 = vadd.f32 1.0, %v975_v13 }
  0x98   : > { %976 = vrcp.f32 %v406_v14 }
  0xa5   : > { %v977_v15 = vpop.eup %976 }
  0xa6   : > { %v409_v16 = vmul.f32 %v977_v15, %v402_v8 }
  0xa8   : > { %875 = vmatmul.mubr.msk.f32.vlgmr.msra.gmra.mxu1 %vm421_vm1, %v409_v16  ;;  %864 = vmatmul.mubr.msk.f32.vlgmr.msra.gmra.mxu0 %vm421_vm1, %v409_v16 }
  0xa9   : > { %885 = vmatprep.mubr.msk.f32.mxu0 %vm1200_vm0, %v1199_v0  ;;  %878 = vmatpush3.msra.mxu0 %v595_v22 }
  0xaa   : > { %879 = vmatprep.subr.mxu0 %v1199_v0 }
  0xab   : > { %880 = vmatpush3.msra.mxu0 %v594_v23 }
  0xac   : > { %881 = vmatprep.subr.mxu0 %v1199_v0 }
  0xad   : > { %882 = vmatpush3.msra.mxu0 %v593_v24 }
  0xae   : > { %883 = vmatprep.subr.mxu0 %v1199_v0 }
  0xaf   : > { %884 = vmatpush3.msra.mxu0 %v592_v25 }
 0x10f   : > { %v578_v17 = vpop.xlane.xlu0 %577 }
 0x110   : > { %v580_v18 = vmul.f32 0.03125, %v578_v17 }
 0x112   : > { %v581_v19 = vsub.f32 %v401_v1, %v580_v18 }
 0x114   : > { %v582_v20 = vmul.f32 %v581_v19, %v581_v19 }
 0x116   : > { %v583_v21 = vsel %vm421_vm1, %v582_v20, 0.0 }
 0x117   : > { %584 = vadd.xlane.f32.xlu0 %v583_v21 }
 0x168   : > { %v572_v26 = vpop.f32.mrf.mxu1  ;;  %v491_v27 = vpop.f32.mrf.mxu0 }
 0x169   : > { %v573_v35 = vadd.f32 %v832_v33, %v572_v26  ;;  %v492_v38 = vadd.f32 %v830_v34, %v491_v27 }
 0x16a   : > { %v876_v28 = vpop.f32.mrf.mxu1  ;;  %v865_v29 = vpop.f32.mrf.mxu0 }
 0x1a0   : > { %v585_v30 = vpop.xlane.xlu0 %584 }
 0x1a1   : > { %v586_v31 = vmul.f32 0.03125, %v585_v30 }
 0x1a3   : > { %v587_v32 = vadd.f32 1e-06, %v586_v31 }
 0x1a5   : > { %978 = vrsqrt.f32 %v587_v32 }
 0x1b2   : > { %v979_v36 = vpop.eup %978 }
 0x1b3   : > { %v589_v37 = vmul.f32 %v979_v36, %v581_v19 }
 0x1b5   : > { %v590_v39 = vmul.f32 %v589_v37, %v573_v35 }
 0x1b7   : > { %v591_v40 = vadd.f32 %v590_v39, %v492_v38 }
 0x1b9   : > { %886 = vmatmul.mubr.msk.f32.vlgmr.msra.gmra.mxu0 %vm421_vm1, %v591_v40 }
 0x279   : > { %v672_v42 = vpop.f32.mrf.mxu0 }
 0x27a   : > { %v673_v43 = vadd.f32 %v834_v41, %v672_v42 }
 0x27b   : > { %v887_v44 = vpop.f32.mrf.mxu0 }
 0x27c   : > { %676 = vst [vmem:[%s400_s20] sm:$0xff] %v673_v43 }
 0x27d   : > { %1127 = shalt.err (!%p1124_p8)
}
 0x27e   : > { %s1128_s19 = scalar_lea.hbm %s1454_s23, 128  ;;  %s1132_s24 = scalar_lea.hbm %s1499_s8, 256 }
 0x27f   : > { %p1129_p10 = scmp.ne.s32.totalorder %s1454_s23, %s1128_s19  ;;  %p1133_p2 = scmp.lt.s32.totalorder %s1454_s23, %s1499_s8 }
 0x280   : > { %p1134_p4 = scmp.lt.s32.totalorder %s1132_s24, %s1128_s19 }
 0x281   : > { %p1130_p1 = pnand %p1129_p10, %p1526_p0 }
 0x282   : > { %p1135_p6 = por %p1134_p4, %p1133_p2 }
 0x283   : > { %p1131_p11 = pneg %p1130_p1 }
 0x285   : > { %p1136_p12 = pnand %p1135_p6, %p1131_p11 }
 0x287   : > { %1139 = shalt.err (!%p1136_p12)
}
 0x288   : > { %904 = dma.vmem_to_hbm [thread:$0]  (%p1526_p0), %s692_s14, 128, %s1454_s23, %s678_s15  }
 0x289 PF: > { %s703_s10 = sand.u32 1, %s1178_s27   ;;  %p1527_p5 = scmp.ne.s32.totalorder %s1510_s12, 0 }
 0x28a   : > { %p1528_p3 = scmp.ge.s32.totalorder %s1190_s30, 2  ;;  %s704_s21 = scalar_lea.sflag [#allocation4], %s703_s10 }
 0x28c   : > { %p924_p7 = pnand %p1528_p3, %p1527_p5 }
 0x28e   : > { %p925_p9 = pneg %p924_p7 }
 0x290   : > { %1173 = dma.done.wait (%p925_p9), %s704_s21, 128  }
 0x291   : > { %1175 = vsyncadd (%p925_p9), %s704_s21, 4294967168  ;;  %s1529_s4 = sld [smem:[#allocation17_spill]]  ;;  %p25_p13 = scmp.ge.s32.totalorder %s1327_s18, 4  }
 0x292   : > { %s1530_s29 = sld [smem:[#allocation18_spill]]  ;;  %s1531_s27 = smov %s1182_s28 }
 0x293   : > { %s1533_s30 = smov %s1327_s18  ;;  %27 = sbr.rel (!%p25_p13) target bundleno = 12 (0xc), region = 122 }
 0x297   : > { %s1532_s28 = smov %s1529_s4 }
 0x298   :  { %709 = vsyncpa [#allocation3], 1 }
 0x299   :  { %711 = vsyncpa [#allocation3 + $0x1], 1 }
 0x29a   :  { %712 = vsyncpa [#allocation6], 1 }
 0x29b   :  { %714 = vsyncpa [#allocation6 + $0x1], 1 }
 0x29c   :  { %715 = vsyncpa [#allocation9], 1 }
 0x29d   :  { %716 = vsyncpa [#allocation4], 1 }
 0x29e   :  { %718 = vsyncpa [#allocation4 + $0x1], 1 }

</bundles_post_ra>
